<compile_context>
chip_gen: v7x
topology: tpu7x:2x2x1
jax: 0.10.0
libtpu: 0.0.40
codegen_flags: <defaults>
</compile_context>

<pallas_src>
import functools

import jax
import jax.numpy as jnp
from jax.experimental import pallas as pl
from jax.experimental.pallas import tpu as pltpu

_EPS = 1e-5          # nn.BatchNorm1d default
_NEG_SLOPE = 0.01    # nn.LeakyReLU default
_LANE = 128
_SUBLANE = 8


def _round_up(n, m):
    return (n + m - 1) // m * m


# ---------------------------------------------------------------------------
# Fast path: whole batch resident in VMEM, single invocation, unrolled layers.
# ---------------------------------------------------------------------------
def _mlp_small_kernel(x_ref, w_ref, bgb_ref, wf_ref, bf_ref, out_ref, *,
                      n_layers, n_valid_rows):
    b_pad = x_ref.shape[0]
    h = x_ref[...].astype(jnp.float32)

    has_pad_rows = (b_pad != n_valid_rows)          # static Python bool
    inv_n = 1.0 / n_valid_rows
    if has_pad_rows:
        rmask = (jax.lax.broadcasted_iota(jnp.int32, (b_pad, 1), 0)
                 < n_valid_rows).astype(jnp.float32)

    for l in range(n_layers):
        bgb = bgb_ref[l]                             # (3, d_pad): bias, gamma, beta
        z = jnp.dot(h.astype(jnp.bfloat16), w_ref[l],
                    preferred_element_type=jnp.float32) + bgb[0:1]
        z = jnp.maximum(z, _NEG_SLOPE * z)           # LeakyReLU
        if has_pad_rows:
            mu = jnp.sum(z * rmask, axis=0, keepdims=True) * inv_n
            d = (z - mu) * rmask
            var = jnp.sum(d * d, axis=0, keepdims=True) * inv_n
        else:
            mu = jnp.mean(z, axis=0, keepdims=True)
            var = jnp.mean(jnp.square(z - mu), axis=0, keepdims=True)
        s = bgb[1:2] * jax.lax.rsqrt(var + _EPS)
        h = z * s + (bgb[2:3] - mu * s)              # folded BN affine

    y = jnp.dot(h.astype(jnp.bfloat16), wf_ref[...],
                preferred_element_type=jnp.float32) + bf_ref[...]
    out_ref[...] = y.astype(out_ref.dtype)


# ---------------------------------------------------------------------------
# Tiled path: grid = (layer pass, batch tile); pre-BN activations ping-pong
# through a 2-slot bf16 HBM buffer so each step does exactly one matmul.
# ---------------------------------------------------------------------------
def _mlp_tiled_kernel(x_ref, w_ref, bgb_ref, wf_ref, bf_ref,
                      y_ref, act_hbm,
                      h_ref, zbuf, sum_ref, sq_ref, scale_ref, shift_ref, sem,
                      *, n_layers, n_tiles, tile_rows, n_valid_rows):
    p = pl.program_id(0)            # pass index: 0 .. n_layers
    t = pl.program_id(1)            # batch-tile index (inner)

    # ---- bring this tile's input activation into h_ref (f32) ----
    @pl.when(p == 0)
    def _():
        h_ref[...] = x_ref[...].astype(jnp.float32)

    @pl.when(p > 0)
    def _():
        # Read layer p-1's pre-BN activation tile from the ping-pong buffer
        # and apply its (now finalized) folded BatchNorm scale/shift.
        src = ((p + 1) % 2) * n_tiles + t            # slot (p-1)%2, tile t
        rd = pltpu.make_async_copy(act_hbm.at[src], zbuf, sem.at[0])
        rd.start()
        rd.wait()
        h_ref[...] = (zbuf[...].astype(jnp.float32) * scale_ref[p - 1]
                      + shift_ref[p - 1])

    # ---- hidden pass p: ONE dot, LeakyReLU, BN statistics, write z back ----
    @pl.when(p < n_layers)
    def _():
        bgb = bgb_ref[p]                             # (3, d_pad): bias, gamma, beta
        z = jnp.dot(h_ref[...].astype(jnp.bfloat16), w_ref[p],
                    preferred_element_type=jnp.float32) + bgb[0:1]
        z = jnp.maximum(z, _NEG_SLOPE * z)

        @pl.when(t == 0)
        def _():
            sum_ref[...] = jnp.zeros_like(sum_ref)
            sq_ref[...] = jnp.zeros_like(sq_ref)

        # Batch-padding rows only ever live in the last tile; gate the mask
        # statically so fully-valid tiles pay zero masking cost.
        if n_valid_rows % tile_rows != 0:
            valid_last = n_valid_rows - (n_tiles - 1) * tile_rows

            @pl.when(t == n_tiles - 1)
            def _():
                rmask = (jax.lax.broadcasted_iota(jnp.int32, (tile_rows, 1), 0)
                         < valid_last).astype(jnp.float32)
                zm = z * rmask
                sum_ref[...] += jnp.sum(zm, axis=0, keepdims=True)
                sq_ref[...] += jnp.sum(zm * zm, axis=0, keepdims=True)

            @pl.when(t != n_tiles - 1)
            def _():
                sum_ref[...] += jnp.sum(z, axis=0, keepdims=True)
                sq_ref[...] += jnp.sum(z * z, axis=0, keepdims=True)
        else:
            sum_ref[...] += jnp.sum(z, axis=0, keepdims=True)
            sq_ref[...] += jnp.sum(z * z, axis=0, keepdims=True)

        # Last tile of this pass: finalize folded BN scale/shift for layer p.
        @pl.when(t == n_tiles - 1)
        def _():
            inv_n = 1.0 / n_valid_rows
            mu = sum_ref[...] * inv_n
            var = jnp.maximum(sq_ref[...] * inv_n - mu * mu, 0.0)  # biased var
            s = bgb[1:2] * jax.lax.rsqrt(var + _EPS)
            scale_ref[p] = s
            shift_ref[p] = bgb[2:3] - mu * s

        # Ship this layer's pre-BN activation (bf16) to HBM slot p % 2.
        zbuf[...] = z.astype(jnp.bfloat16)
        dst = (p % 2) * n_tiles + t
        wr = pltpu.make_async_copy(zbuf, act_hbm.at[dst], sem.at[1])
        wr.start()
        wr.wait()

    # ---- final pass: plain Linear, lane-dense output store ----
    @pl.when(p == n_layers)
    def _():
        y = jnp.dot(h_ref[...].astype(jnp.bfloat16), wf_ref[...],
                    preferred_element_type=jnp.float32) + bf_ref[...]
        y_ref[...] = y.astype(y_ref.dtype)


def mlp_forward(x, params, *, tile_rows=1024, force_tiled=False):
    """params: [(W, b, gamma, beta)] * n_hidden + [(Wf, bf)].
    Weight matrices are stored (in, out), i.e. already transposed from torch."""
    n_layers = len(params) - 1
    in_size = params[0][0].shape[0]
    hidden = [p[0].shape[1] for p in params[:-1]]
    out_size = params[-1][0].shape[1]

    # Lane-pad every feature dim to a multiple of 128.
    d_pad = _round_up(max([in_size] + hidden), _LANE)
    o_pad = _round_up(out_size, _LANE)

    # Stack / pad parameters once.  bias/gamma/beta packed into one array.
    w_stack = jnp.zeros((n_layers, d_pad, d_pad), jnp.float32)
    bgb = jnp.zeros((n_layers, 3, d_pad), jnp.float32)
    for l, (w, b, g, be) in enumerate(params[:-1]):
        w_stack = w_stack.at[l, :w.shape[0], :w.shape[1]].set(w)
        bgb = bgb.at[l, 0, :b.size].set(b.reshape(-1))
        bgb = bgb.at[l, 1, :g.size].set(g.reshape(-1))
        bgb = bgb.at[l, 2, :be.size].set(be.reshape(-1))
    wf, bf = params[-1]
    wf_pad = jnp.zeros((d_pad, o_pad), jnp.float32
                       ).at[:wf.shape[0], :wf.shape[1]].set(wf)
    bf_pad = jnp.zeros((1, o_pad), jnp.float32).at[0, :bf.size].set(bf.reshape(-1))

    # bf16 MXU operands (cast weights once); f32 accumulation in-kernel.
    w_stack = w_stack.astype(jnp.bfloat16)
    wf_pad = wf_pad.astype(jnp.bfloat16)

    batch = x.shape[0]

    # ------------------------- small-batch fast path -------------------------
    b8 = _round_up(batch, _SUBLANE)
    weight_bytes = (w_stack.size * 2 + bgb.size * 4 + wf_pad.size * 2
                    + bf_pad.size * 4)
    est_fast = b8 * d_pad * 10 + b8 * o_pad * 4 + weight_bytes
    if (not force_tiled) and est_fast <= 8 * 1024 * 1024:
        x_pad = jnp.zeros((b8, d_pad), jnp.bfloat16
                          ).at[:batch, :in_size].set(x.astype(jnp.bfloat16))
        kernel = functools.partial(_mlp_small_kernel, n_layers=n_layers,
                                   n_valid_rows=batch)
        vmem = pl.BlockSpec(memory_space=pltpu.MemorySpace.VMEM)
        out_pad = pl.pallas_call(
            kernel,
            out_shape=jax.ShapeDtypeStruct((b8, o_pad), jnp.float32),
            in_specs=[vmem, vmem, vmem, vmem, vmem],
            out_specs=vmem,
            compiler_params=pltpu.CompilerParams(
                vmem_limit_bytes=32 * 1024 * 1024),
        )(x_pad, w_stack, bgb, wf_pad, bf_pad)
        return jnp.squeeze(out_pad[:batch, :out_size])

    # ------------------------- tiled path (large batch) ----------------------
    tb = _round_up(min(tile_rows, batch), _SUBLANE)
    b_pad = _round_up(batch, tb)
    n_tiles = b_pad // tb
    x_pad = jnp.zeros((b_pad, d_pad), jnp.bfloat16
                      ).at[:batch, :in_size].set(x.astype(jnp.bfloat16))

    kernel = functools.partial(_mlp_tiled_kernel, n_layers=n_layers,
                               n_tiles=n_tiles, tile_rows=tb,
                               n_valid_rows=batch)

    out_pad, _ = pl.pallas_call(
        kernel,
        out_shape=(
            jax.ShapeDtypeStruct((b_pad, o_pad), jnp.float32),           # y
            jax.ShapeDtypeStruct((2 * n_tiles, tb, d_pad), jnp.bfloat16),  # z ping-pong
        ),
        grid=(n_layers + 1, n_tiles),
        in_specs=[
            # x is only consumed at pass 0; collapse its index afterwards so it
            # is not re-DMA'd on every pass.
            pl.BlockSpec((tb, d_pad), lambda p, t: (jnp.where(p == 0, t, 0), 0)),
            pl.BlockSpec((n_layers, d_pad, d_pad), lambda p, t: (0, 0, 0)),  # W
            pl.BlockSpec((n_layers, 3, d_pad), lambda p, t: (0, 0, 0)),      # b/g/beta
            pl.BlockSpec((d_pad, o_pad), lambda p, t: (0, 0)),               # Wf
            pl.BlockSpec((1, o_pad), lambda p, t: (0, 0)),                   # bf
        ],
        out_specs=(
            # Output block index only advances during the final pass: no stale
            # VMEM writebacks on hidden passes.
            pl.BlockSpec((tb, o_pad),
                         lambda p, t: (jnp.where(p == n_layers, t, 0), 0)),
            pl.BlockSpec(memory_space=pl.ANY),       # HBM activation ping-pong
        ),
        scratch_shapes=[
            pltpu.VMEM((tb, d_pad), jnp.float32),            # h (current input)
            pltpu.VMEM((tb, d_pad), jnp.bfloat16),           # z DMA staging
            pltpu.VMEM((1, d_pad), jnp.float32),             # batch sum
            pltpu.VMEM((1, d_pad), jnp.float32),             # batch sum of squares
            pltpu.VMEM((n_layers, 1, d_pad), jnp.float32),   # folded BN scale
            pltpu.VMEM((n_layers, 1, d_pad), jnp.float32),   # folded BN shift
            pltpu.SemaphoreType.DMA((2,)),                   # read / write sems
        ],
        compiler_params=pltpu.CompilerParams(
            # Cross-tile BN accumulators -> both grid axes stay sequential.
            dimension_semantics=("arbitrary", "arbitrary"),
            vmem_limit_bytes=48 * 1024 * 1024),
    )(x_pad, w_stack, bgb, wf_pad, bf_pad)

    out = out_pad[:batch, :out_size]
    # MLP.forward does y.squeeze() on the result (glue, outside the kernel).
    return jnp.squeeze(out)


def mlp_reference(x, params):
    """Pure-JAX reference mirroring the kernel's bf16-operand / f32-accum dots."""
    def bdot(a, w):
        return jnp.dot(a.astype(jnp.bfloat16).astype(jnp.float32),
                       w.astype(jnp.bfloat16).astype(jnp.float32))
    h = x.astype(jnp.float32)
    for w, b, g, be in params[:-1]:
        z = bdot(h, w) + b
        z = jnp.maximum(z, _NEG_SLOPE * z)
        mu = jnp.mean(z, axis=0, keepdims=True)
        var = jnp.mean((z - mu) ** 2, axis=0, keepdims=True)
        h = g * (z - mu) * jax.lax.rsqrt(var + _EPS) + be
    wf, bf = params[-1]
    return jnp.squeeze(bdot(h, wf) + bf)


def init_params(key, input_size, output_size, hidden_sizes):
    """Linear weights/bias ~ U(-1/sqrt(fan_in), +); BN gamma=1, beta=0."""
    params = []
    last = input_size
    for h in hidden_sizes:
        key, kw, kb = jax.random.split(key, 3)
        bound = 1.0 / jnp.sqrt(last)
        w_t = jax.random.uniform(kw, (last, h), jnp.float32, -bound, bound)
        b = jax.random.uniform(kb, (1, h), jnp.float32, -bound, bound)
        params.append((w_t, b, jnp.ones((1, h), jnp.float32),
                       jnp.zeros((1, h), jnp.float32)))
        last = h
    key, kw, kb = jax.random.split(key, 3)
    bound = 1.0 / jnp.sqrt(last)
    wf_t = jax.random.uniform(kw, (last, output_size), jnp.float32, -bound, bound)
    bf = jax.random.uniform(kb, (1, output_size), jnp.float32, -bound, bound)
    params.append((wf_t, bf))
    return params


if __name__ == "__main__":
    key = jax.random.PRNGKey(0)
    batch = 16
    input_size = 32
    output_size = 3
    hidden_sizes = [32, 16, 8, 4]

    key, kx = jax.random.split(key)
    x = jax.random.normal(kx, (batch, input_size), jnp.float32)
    params = init_params(key, input_size, output_size, hidden_sizes)

    y_ref = mlp_reference(x, params)

    # Fast path (default for this batch size): whole batch resident in VMEM.
    y_fast = mlp_forward(x, params)
    jax.block_until_ready(y_fast)
    assert y_fast.shape == (batch, output_size)
    err_fast = float(jnp.max(jnp.abs(y_fast - y_ref)))
    assert err_fast < 2e-2, f"fast path vs reference max abs error {err_fast}"

    # Tiled path: force 2 batch tiles to exercise the HBM activation ping-pong
    # and cross-tile BN statistics.  Slightly looser tolerance because the
    # ping-pong stores pre-BN activations in bf16 (one extra rounding/layer).
    y_tiled = mlp_forward(x, params, tile_rows=8, force_tiled=True)
    jax.block_until_ready(y_tiled)
    assert y_tiled.shape == (batch, output_size)
    err_tiled = float(jnp.max(jnp.abs(y_tiled - y_ref)))
    assert err_tiled < 5e-2, f"tiled path vs reference max abs error {err_tiled}"

    print("KERNEL_OK")
</pallas_src>

<mosaic_0001>
module attributes {stable_mosaic.version = 11 : i64} {
  func.func @_mlp_small_kernel(%arg0: memref<16x128xbf16, #tpu.memory_space<vmem>>, %arg1: memref<4x128x128xbf16, #tpu.memory_space<vmem>>, %arg2: memref<4x3x128xf32, #tpu.memory_space<vmem>>, %arg3: memref<128x128xbf16, #tpu.memory_space<vmem>>, %arg4: memref<1x128xf32, #tpu.memory_space<vmem>>, %arg5: memref<16x128xf32, #tpu.memory_space<vmem>>) attributes {dimension_semantics = [], scalar_prefetch = 0 : i64, scratch_operands = 0 : i64, tpu.core_type = #tpu.core_type<tc>} {
    %c0 = arith.constant 0 : index
    %c0_0 = arith.constant 0 : index
    %0 = vector.load %arg0[%c0, %c0_0] : memref<16x128xbf16, #tpu.memory_space<vmem>>, vector<16x128xbf16>
    %1 = arith.extf %0 : vector<16x128xbf16> to vector<16x128xf32>
    %c0_1 = arith.constant 0 : index
    %c0_2 = arith.constant 0 : index
    %c0_3 = arith.constant 0 : index
    %2 = vector.load %arg2[%c0_1, %c0_2, %c0_3] : memref<4x3x128xf32, #tpu.memory_space<vmem>>, vector<1x3x128xf32>
    %3 = vector.shape_cast %2 : vector<1x3x128xf32> to vector<3x128xf32>
    %4 = arith.truncf %1 : vector<16x128xf32> to vector<16x128xbf16>
    %c0_4 = arith.constant 0 : index
    %c0_5 = arith.constant 0 : index
    %c0_6 = arith.constant 0 : index
    %5 = vector.load %arg1[%c0_4, %c0_5, %c0_6] : memref<4x128x128xbf16, #tpu.memory_space<vmem>>, vector<1x128x128xbf16>
    %6 = vector.shape_cast %5 : vector<1x128x128xbf16> to vector<128x128xbf16>
    %cst = arith.constant dense<0.000000e+00> : vector<16x128xf32>
    %7 = tpu.matmul %4, %6, %cst {dimension_numbers = #tpu.dot_dimension_numbers<[1], [0], [0], [1], [0, 0, 1, 1], [], []>} : vector<16x128xbf16>, vector<128x128xbf16>, vector<16x128xf32> -> vector<16x128xf32>
    %8 = vector.extract_strided_slice %3 {offsets = [0, 0], sizes = [1, 128], strides = [1, 1]} : vector<3x128xf32> to vector<1x128xf32>
    %9 = vector.broadcast %8 : vector<1x128xf32> to vector<16x128xf32>
    %10 = arith.addf %7, %9 : vector<16x128xf32>
    %cst_7 = arith.constant 0.00999999977 : f32
    %11 = vector.broadcast %cst_7 : f32 to vector<16x128xf32>
    %12 = arith.mulf %11, %10 : vector<16x128xf32>
    %13 = arith.maximumf %10, %12 : vector<16x128xf32>
    %cst_8 = arith.constant dense<0.000000e+00> : vector<128xf32>
    %14 = vector.multi_reduction <add>, %13, %cst_8 [0] : vector<16x128xf32> to vector<128xf32>
    %15 = vector.shape_cast %14 : vector<128xf32> to vector<1x128xf32>
    %cst_9 = arith.constant 1.600000e+01 : f32
    %16 = vector.broadcast %cst_9 : f32 to vector<1x128xf32>
    %17 = arith.divf %15, %16 : vector<1x128xf32>
    %18 = vector.broadcast %17 : vector<1x128xf32> to vector<16x128xf32>
    %19 = arith.subf %13, %18 : vector<16x128xf32>
    %20 = arith.mulf %19, %19 : vector<16x128xf32>
    %cst_10 = arith.constant dense<0.000000e+00> : vector<128xf32>
    %21 = vector.multi_reduction <add>, %20, %cst_10 [0] : vector<16x128xf32> to vector<128xf32>
    %22 = vector.shape_cast %21 : vector<128xf32> to vector<1x128xf32>
    %cst_11 = arith.constant 1.600000e+01 : f32
    %23 = vector.broadcast %cst_11 : f32 to vector<1x128xf32>
    %24 = arith.divf %22, %23 : vector<1x128xf32>
    %25 = vector.extract_strided_slice %3 {offsets = [1, 0], sizes = [1, 128], strides = [1, 1]} : vector<3x128xf32> to vector<1x128xf32>
    %cst_12 = arith.constant 9.99999974E-6 : f32
    %26 = vector.broadcast %cst_12 : f32 to vector<1x128xf32>
    %27 = arith.addf %24, %26 : vector<1x128xf32>
    %28 = math.rsqrt %27 : vector<1x128xf32>
    %29 = arith.mulf %25, %28 : vector<1x128xf32>
    %30 = vector.broadcast %29 : vector<1x128xf32> to vector<16x128xf32>
    %31 = arith.mulf %13, %30 : vector<16x128xf32>
    %32 = vector.extract_strided_slice %3 {offsets = [2, 0], sizes = [1, 128], strides = [1, 1]} : vector<3x128xf32> to vector<1x128xf32>
    %33 = arith.mulf %17, %29 : vector<1x128xf32>
    %34 = arith.subf %32, %33 : vector<1x128xf32>
    %35 = vector.broadcast %34 : vector<1x128xf32> to vector<16x128xf32>
    %36 = arith.addf %31, %35 : vector<16x128xf32>
    %c1 = arith.constant 1 : index
    %c0_13 = arith.constant 0 : index
    %c0_14 = arith.constant 0 : index
    %37 = vector.load %arg2[%c1, %c0_13, %c0_14] : memref<4x3x128xf32, #tpu.memory_space<vmem>>, vector<1x3x128xf32>
    %38 = vector.shape_cast %37 : vector<1x3x128xf32> to vector<3x128xf32>
    %39 = arith.truncf %36 : vector<16x128xf32> to vector<16x128xbf16>
    %c1_15 = arith.constant 1 : index
    %c0_16 = arith.constant 0 : index
    %c0_17 = arith.constant 0 : index
    %40 = vector.load %arg1[%c1_15, %c0_16, %c0_17] : memref<4x128x128xbf16, #tpu.memory_space<vmem>>, vector<1x128x128xbf16>
    %41 = vector.shape_cast %40 : vector<1x128x128xbf16> to vector<128x128xbf16>
    %cst_18 = arith.constant dense<0.000000e+00> : vector<16x128xf32>
    %42 = tpu.matmul %39, %41, %cst_18 {dimension_numbers = #tpu.dot_dimension_numbers<[1], [0], [0], [1], [0, 0, 1, 1], [], []>} : vector<16x128xbf16>, vector<128x128xbf16>, vector<16x128xf32> -> vector<16x128xf32>
    %43 = vector.extract_strided_slice %38 {offsets = [0, 0], sizes = [1, 128], strides = [1, 1]} : vector<3x128xf32> to vector<1x128xf32>
    %44 = vector.broadcast %43 : vector<1x128xf32> to vector<16x128xf32>
    %45 = arith.addf %42, %44 : vector<16x128xf32>
    %cst_19 = arith.constant 0.00999999977 : f32
    %46 = vector.broadcast %cst_19 : f32 to vector<16x128xf32>
    %47 = arith.mulf %46, %45 : vector<16x128xf32>
    %48 = arith.maximumf %45, %47 : vector<16x128xf32>
    %cst_20 = arith.constant dense<0.000000e+00> : vector<128xf32>
    %49 = vector.multi_reduction <add>, %48, %cst_20 [0] : vector<16x128xf32> to vector<128xf32>
    %50 = vector.shape_cast %49 : vector<128xf32> to vector<1x128xf32>
    %cst_21 = arith.constant 1.600000e+01 : f32
    %51 = vector.broadcast %cst_21 : f32 to vector<1x128xf32>
    %52 = arith.divf %50, %51 : vector<1x128xf32>
    %53 = vector.broadcast %52 : vector<1x128xf32> to vector<16x128xf32>
    %54 = arith.subf %48, %53 : vector<16x128xf32>
    %55 = arith.mulf %54, %54 : vector<16x128xf32>
    %cst_22 = arith.constant dense<0.000000e+00> : vector<128xf32>
    %56 = vector.multi_reduction <add>, %55, %cst_22 [0] : vector<16x128xf32> to vector<128xf32>
    %57 = vector.shape_cast %56 : vector<128xf32> to vector<1x128xf32>
    %cst_23 = arith.constant 1.600000e+01 : f32
    %58 = vector.broadcast %cst_23 : f32 to vector<1x128xf32>
    %59 = arith.divf %57, %58 : vector<1x128xf32>
    %60 = vector.extract_strided_slice %38 {offsets = [1, 0], sizes = [1, 128], strides = [1, 1]} : vector<3x128xf32> to vector<1x128xf32>
    %cst_24 = arith.constant 9.99999974E-6 : f32
    %61 = vector.broadcast %cst_24 : f32 to vector<1x128xf32>
    %62 = arith.addf %59, %61 : vector<1x128xf32>
    %63 = math.rsqrt %62 : vector<1x128xf32>
    %64 = arith.mulf %60, %63 : vector<1x128xf32>
    %65 = vector.broadcast %64 : vector<1x128xf32> to vector<16x128xf32>
    %66 = arith.mulf %48, %65 : vector<16x128xf32>
    %67 = vector.extract_strided_slice %38 {offsets = [2, 0], sizes = [1, 128], strides = [1, 1]} : vector<3x128xf32> to vector<1x128xf32>
    %68 = arith.mulf %52, %64 : vector<1x128xf32>
    %69 = arith.subf %67, %68 : vector<1x128xf32>
    %70 = vector.broadcast %69 : vector<1x128xf32> to vector<16x128xf32>
    %71 = arith.addf %66, %70 : vector<16x128xf32>
    %c2 = arith.constant 2 : index
    %c0_25 = arith.constant 0 : index
    %c0_26 = arith.constant 0 : index
    %72 = vector.load %arg2[%c2, %c0_25, %c0_26] : memref<4x3x128xf32, #tpu.memory_space<vmem>>, vector<1x3x128xf32>
    %73 = vector.shape_cast %72 : vector<1x3x128xf32> to vector<3x128xf32>
    %74 = arith.truncf %71 : vector<16x128xf32> to vector<16x128xbf16>
    %c2_27 = arith.constant 2 : index
    %c0_28 = arith.constant 0 : index
    %c0_29 = arith.constant 0 : index
    %75 = vector.load %arg1[%c2_27, %c0_28, %c0_29] : memref<4x128x128xbf16, #tpu.memory_space<vmem>>, vector<1x128x128xbf16>
    %76 = vector.shape_cast %75 : vector<1x128x128xbf16> to vector<128x128xbf16>
    %cst_30 = arith.constant dense<0.000000e+00> : vector<16x128xf32>
    %77 = tpu.matmul %74, %76, %cst_30 {dimension_numbers = #tpu.dot_dimension_numbers<[1], [0], [0], [1], [0, 0, 1, 1], [], []>} : vector<16x128xbf16>, vector<128x128xbf16>, vector<16x128xf32> -> vector<16x128xf32>
    %78 = vector.extract_strided_slice %73 {offsets = [0, 0], sizes = [1, 128], strides = [1, 1]} : vector<3x128xf32> to vector<1x128xf32>
    %79 = vector.broadcast %78 : vector<1x128xf32> to vector<16x128xf32>
    %80 = arith.addf %77, %79 : vector<16x128xf32>
    %cst_31 = arith.constant 0.00999999977 : f32
    %81 = vector.broadcast %cst_31 : f32 to vector<16x128xf32>
    %82 = arith.mulf %81, %80 : vector<16x128xf32>
    %83 = arith.maximumf %80, %82 : vector<16x128xf32>
    %cst_32 = arith.constant dense<0.000000e+00> : vector<128xf32>
    %84 = vector.multi_reduction <add>, %83, %cst_32 [0] : vector<16x128xf32> to vector<128xf32>
    %85 = vector.shape_cast %84 : vector<128xf32> to vector<1x128xf32>
    %cst_33 = arith.constant 1.600000e+01 : f32
    %86 = vector.broadcast %cst_33 : f32 to vector<1x128xf32>
    %87 = arith.divf %85, %86 : vector<1x128xf32>
    %88 = vector.broadcast %87 : vector<1x128xf32> to vector<16x128xf32>
    %89 = arith.subf %83, %88 : vector<16x128xf32>
    %90 = arith.mulf %89, %89 : vector<16x128xf32>
    %cst_34 = arith.constant dense<0.000000e+00> : vector<128xf32>
    %91 = vector.multi_reduction <add>, %90, %cst_34 [0] : vector<16x128xf32> to vector<128xf32>
    %92 = vector.shape_cast %91 : vector<128xf32> to vector<1x128xf32>
    %cst_35 = arith.constant 1.600000e+01 : f32
    %93 = vector.broadcast %cst_35 : f32 to vector<1x128xf32>
    %94 = arith.divf %92, %93 : vector<1x128xf32>
    %95 = vector.extract_strided_slice %73 {offsets = [1, 0], sizes = [1, 128], strides = [1, 1]} : vector<3x128xf32> to vector<1x128xf32>
    %cst_36 = arith.constant 9.99999974E-6 : f32
    %96 = vector.broadcast %cst_36 : f32 to vector<1x128xf32>
    %97 = arith.addf %94, %96 : vector<1x128xf32>
    %98 = math.rsqrt %97 : vector<1x128xf32>
    %99 = arith.mulf %95, %98 : vector<1x128xf32>
    %100 = vector.broadcast %99 : vector<1x128xf32> to vector<16x128xf32>
    %101 = arith.mulf %83, %100 : vector<16x128xf32>
    %102 = vector.extract_strided_slice %73 {offsets = [2, 0], sizes = [1, 128], strides = [1, 1]} : vector<3x128xf32> to vector<1x128xf32>
    %103 = arith.mulf %87, %99 : vector<1x128xf32>
    %104 = arith.subf %102, %103 : vector<1x128xf32>
    %105 = vector.broadcast %104 : vector<1x128xf32> to vector<16x128xf32>
    %106 = arith.addf %101, %105 : vector<16x128xf32>
    %c3 = arith.constant 3 : index
    %c0_37 = arith.constant 0 : index
    %c0_38 = arith.constant 0 : index
    %107 = vector.load %arg2[%c3, %c0_37, %c0_38] : memref<4x3x128xf32, #tpu.memory_space<vmem>>, vector<1x3x128xf32>
    %108 = vector.shape_cast %107 : vector<1x3x128xf32> to vector<3x128xf32>
    %109 = arith.truncf %106 : vector<16x128xf32> to vector<16x128xbf16>
    %c3_39 = arith.constant 3 : index
    %c0_40 = arith.constant 0 : index
    %c0_41 = arith.constant 0 : index
    %110 = vector.load %arg1[%c3_39, %c0_40, %c0_41] : memref<4x128x128xbf16, #tpu.memory_space<vmem>>, vector<1x128x128xbf16>
    %111 = vector.shape_cast %110 : vector<1x128x128xbf16> to vector<128x128xbf16>
    %cst_42 = arith.constant dense<0.000000e+00> : vector<16x128xf32>
    %112 = tpu.matmul %109, %111, %cst_42 {dimension_numbers = #tpu.dot_dimension_numbers<[1], [0], [0], [1], [0, 0, 1, 1], [], []>} : vector<16x128xbf16>, vector<128x128xbf16>, vector<16x128xf32> -> vector<16x128xf32>
    %113 = vector.extract_strided_slice %108 {offsets = [0, 0], sizes = [1, 128], strides = [1, 1]} : vector<3x128xf32> to vector<1x128xf32>
    %114 = vector.broadcast %113 : vector<1x128xf32> to vector<16x128xf32>
    %115 = arith.addf %112, %114 : vector<16x128xf32>
    %cst_43 = arith.constant 0.00999999977 : f32
    %116 = vector.broadcast %cst_43 : f32 to vector<16x128xf32>
    %117 = arith.mulf %116, %115 : vector<16x128xf32>
    %118 = arith.maximumf %115, %117 : vector<16x128xf32>
    %cst_44 = arith.constant dense<0.000000e+00> : vector<128xf32>
    %119 = vector.multi_reduction <add>, %118, %cst_44 [0] : vector<16x128xf32> to vector<128xf32>
    %120 = vector.shape_cast %119 : vector<128xf32> to vector<1x128xf32>
    %cst_45 = arith.constant 1.600000e+01 : f32
    %121 = vector.broadcast %cst_45 : f32 to vector<1x128xf32>
    %122 = arith.divf %120, %121 : vector<1x128xf32>
    %123 = vector.broadcast %122 : vector<1x128xf32> to vector<16x128xf32>
    %124 = arith.subf %118, %123 : vector<16x128xf32>
    %125 = arith.mulf %124, %124 : vector<16x128xf32>
    %cst_46 = arith.constant dense<0.000000e+00> : vector<128xf32>
    %126 = vector.multi_reduction <add>, %125, %cst_46 [0] : vector<16x128xf32> to vector<128xf32>
    %127 = vector.shape_cast %126 : vector<128xf32> to vector<1x128xf32>
    %cst_47 = arith.constant 1.600000e+01 : f32
    %128 = vector.broadcast %cst_47 : f32 to vector<1x128xf32>
    %129 = arith.divf %127, %128 : vector<1x128xf32>
    %130 = vector.extract_strided_slice %108 {offsets = [1, 0], sizes = [1, 128], strides = [1, 1]} : vector<3x128xf32> to vector<1x128xf32>
    %cst_48 = arith.constant 9.99999974E-6 : f32
    %131 = vector.broadcast %cst_48 : f32 to vector<1x128xf32>
    %132 = arith.addf %129, %131 : vector<1x128xf32>
    %133 = math.rsqrt %132 : vector<1x128xf32>
    %134 = arith.mulf %130, %133 : vector<1x128xf32>
    %135 = vector.broadcast %134 : vector<1x128xf32> to vector<16x128xf32>
    %136 = arith.mulf %118, %135 : vector<16x128xf32>
    %137 = vector.extract_strided_slice %108 {offsets = [2, 0], sizes = [1, 128], strides = [1, 1]} : vector<3x128xf32> to vector<1x128xf32>
    %138 = arith.mulf %122, %134 : vector<1x128xf32>
    %139 = arith.subf %137, %138 : vector<1x128xf32>
    %140 = vector.broadcast %139 : vector<1x128xf32> to vector<16x128xf32>
    %141 = arith.addf %136, %140 : vector<16x128xf32>
    %142 = arith.truncf %141 : vector<16x128xf32> to vector<16x128xbf16>
    %c0_49 = arith.constant 0 : index
    %c0_50 = arith.constant 0 : index
    %143 = vector.load %arg3[%c0_49, %c0_50] : memref<128x128xbf16, #tpu.memory_space<vmem>>, vector<128x128xbf16>
    %cst_51 = arith.constant dense<0.000000e+00> : vector<16x128xf32>
    %144 = tpu.matmul %142, %143, %cst_51 {dimension_numbers = #tpu.dot_dimension_numbers<[1], [0], [0], [1], [0, 0, 1, 1], [], []>} : vector<16x128xbf16>, vector<128x128xbf16>, vector<16x128xf32> -> vector<16x128xf32>
    %c0_52 = arith.constant 0 : index
    %c0_53 = arith.constant 0 : index
    %145 = vector.load %arg4[%c0_52, %c0_53] : memref<1x128xf32, #tpu.memory_space<vmem>>, vector<1x128xf32>
    %146 = vector.broadcast %145 : vector<1x128xf32> to vector<16x128xf32>
    %147 = arith.addf %144, %146 : vector<16x128xf32>
    %c0_54 = arith.constant 0 : index
    %c0_55 = arith.constant 0 : index
    %148 = vector.load %arg5[%c0_54, %c0_55] : memref<16x128xf32, #tpu.memory_space<vmem>>, vector<16x128xf32>
    tpu.vector_store %arg5[%c0_54, %c0_55], %147 {strides = array<i32>} : memref<16x128xf32, #tpu.memory_space<vmem>>, vector<16x128xf32>,
    return
  }
}

</mosaic_0001>

<bundles_post_ra>
// kernel: tpu_custom_call.1
= control target key start
LH: loop header
LB: loop body
LE: loop exit
PB: predicated region body
PF: predicated region fallthrough
CT: control target
= control target key end

     0   :  { %10 = vsyncpa [#allocation3], 0  ;;  %s1298_s0 = inlined_call_operand.vmem [shape: bf16[16,128], index: 0, kind: input, shape index: {}]   ;;  %s1299_s1 = inlined_call_operand.hbm [shape: bf16[4,128,128], index: 1, kind: input, shape index: {}]   ;;  %s1300_s2 = inlined_call_operand.vmem [shape: f32[4,3,128], index: 2, kind: input, shape index: {}]   ;;  %s1301_s3 = inlined_call_operand.hbm [shape: bf16[128,128], index: 3, kind: input, shape index: {}]   ;;  %s1302_s4 = inlined_call_operand.vmem [shape: f32[1,128], index: 4, kind: input, shape index: {}]   ;;  %s1303_s5 = inlined_call_operand.hbm [shape: f32[16,128], index: 5, kind: output, shape index: {}]  }
   0x1   :  { %11 = vsyncpa [#allocation6], 0 }
   0x2   :  { %12 = vsyncpa [#allocation4], 0  ;;  %s1137_s18 = smov [#allocation2]   ;;  %s1065_s22 = scalar_lea.hbm %s1299_s1, 4096 }
   0x3   :  { %s20_s19 = sshll.u32 %s1137_s18, 4  ;;  %p1066_p0 = scmp.ne.s32.totalorder %s1299_s1, %s1065_s22  ;;  %s21_s19 = int_to_ptr.vmem [resolvable:$true] %s20_s19 }
   0x4   :  { %p1069_p1 = scmp.lt.u32.totalorder %s1065_s22, %s1299_s1 }
   0x6   :  { %p1071_p2 = pnand %p1069_p1, %p1066_p0 }
   0x8   :  { %1074 = shalt.err (!%p1071_p2)
}
   0x9   :  { %s1075_s27 = scalar_lea.vmem %s21_s19, 4096  ;;  %p1080_p4 = scmp.lt.s32.totalorder %s21_s19, %s21_s19 }
   0xa   :  { %p1076_p3 = scmp.ne.s32.totalorder %s21_s19, %s1075_s27  ;;  %p1081_p5 = scmp.lt.s32.totalorder %s1075_s27, %s1075_s27 }
   0xc   :  { %p1082_p6 = por %p1081_p5, %p1080_p4 }
   0xe   :  { %p1083_p7 = pnand %p1082_p6, %p1076_p3 }
  0x10   :  { %1086 = shalt.err (!%p1083_p7)
}
  0x11   :  { %s1138_s28 = smov 64   ;;  %s1139_s29 = smov 4  }
  0x12   :  { %26 = dma.hbm_to_vmem [thread:$0]  %s1299_s1, 4096, %s21_s19, [#allocation3], %s1138_s28, %s1138_s28, %s1139_s29  }
  0x13   :  { %s1140_s7 = smov [#allocation5]   ;;  %s1087_s11 = scalar_lea.hbm %s1301_s3, 1024 }
  0x14   :  { %s34_s8 = sshll.u32 %s1140_s7, 4  ;;  %p1088_p8 = scmp.ne.s32.totalorder %s1301_s3, %s1087_s11  ;;  %s35_s8 = int_to_ptr.vmem [resolvable:$true] %s34_s8 }
  0x15   :  { %p1091_p9 = scmp.lt.u32.totalorder %s1087_s11, %s1301_s3 }
  0x17   :  { %p1093_p10 = pnand %p1091_p9, %p1088_p8 }
  0x19   :  { %1096 = shalt.err (!%p1093_p10)
}
  0x1a   :  { %s1097_s16 = scalar_lea.vmem %s35_s8, 1024  ;;  %p1102_p12 = scmp.lt.s32.totalorder %s35_s8, %s35_s8 }
  0x1b   :  { %p1098_p11 = scmp.ne.s32.totalorder %s35_s8, %s1097_s16  ;;  %p1103_p13 = scmp.lt.s32.totalorder %s1097_s16, %s1097_s16 }
  0x1d   :  { %p1104_p0 = por %p1103_p13, %p1102_p12 }
  0x1f   :  { %p1105_p1 = pnand %p1104_p0, %p1098_p11 }
  0x21   :  { %1108 = shalt.err (!%p1105_p1)
}
  0x22   :  { %40 = dma.hbm_to_vmem [thread:$0]  %s1301_s3, 1024, %s35_s8, [#allocation6], %s1138_s28, %s1138_s28, %s1139_s29  }
  0x23   :  { %1131 = dma.done.wait [#allocation3], 4096  }
  0x24   :  { %1132 = vsyncadd [#allocation3], 4294963200 }
  0x25   :  { %1133 = dma.done.wait [#allocation6], 1024  }
  0x26   :  { %1134 = vsyncadd [#allocation6], 4294966272  ;;  %v1141_v0 = vmov 0.0   ;;  %vm1142_vm0 = vmmov 0   ;;  %v1016_v1 = vld [vmem:[#allocation2] sm:$0xff]   ;;  %v1017_v2 = vld [vmem:[#allocation2 + $0x8] sm:$0xff]   ;;  %v69_v18 = vlaneseq }
  0x27   :  { %907 = vmatprep.subr.bf16.mxu0 %v1141_v0  ;;  %923 = vmatprep.mubr.msk.bf16.mxu0 %vm1142_vm0, %v1141_v0  ;;  %v1018_v3 = vld [vmem:[#allocation2 + $0x10] sm:$0xff]   ;;  %v1019_v4 = vld [vmem:[#allocation2 + $0x18] sm:$0xff]   ;;  %v1020_v5 = vld [vmem:[#allocation2 + $0x20] sm:$0xff]   ;;  %s1143_s27 = smov [#allocation7]  }
  0x28   :  { %927 = vmatprep.subr.bf16.mxu1 %v1141_v0  ;;  %943 = vmatprep.mubr.msk.bf16.mxu1 %vm1142_vm0, %v1141_v0  ;;  %v1021_v6 = vld [vmem:[#allocation2 + $0x28] sm:$0xff]   ;;  %v1022_v7 = vld [vmem:[#allocation2 + $0x30] sm:$0xff]   ;;  %v1023_v8 = vld [vmem:[#allocation2 + $0x38] sm:$0xff]   ;;  %v70_v19 = vshrl.u32 %v69_v18, 7  ;;  %s804_s28 = sshll.u32 %s1143_s27, 4  ;;  %s805_s28 = int_to_ptr.vmem [resolvable:$true] %s804_s28 }
  0x29   :  { %908 = vmatpush3.bf16.msra.mxu0 %v1016_v1  ;;  %v1024_v9 = vld [vmem:[%s1298_s0] sm:$0xff]   ;;  %v1026_v11 = vld [vmem:[#allocation2 + $0x48] sm:$0xff]   ;;  %v1027_v12 = vld [vmem:[#allocation2 + $0x50] sm:$0xff]   ;;  %s1109_s29 = scalar_lea.vmem %s805_s28, 256  ;;  %p1114_p3 = scmp.lt.s32.totalorder %s805_s28, %s805_s28 }
  0x2a   :  { %909 = vmatprep.subr.bf16.mxu0 %v1141_v0  ;;  %v1025_v10 = vld [vmem:[#allocation2 + $0x40] sm:$0xff]   ;;  %v1028_v13 = vld [vmem:[#allocation2 + $0x58] sm:$0xff]   ;;  %v1030_v15 = vld [vmem:[#allocation2 + $0x68] sm:$0xff]   ;;  %v1227_v20 = vsub.s32 0, %v70_v19  ;;  %v1233_v54 = vsub.s32 1, %v70_v19  ;;  %v1236_v62 = vsub.s32 2, %v70_v19  ;;  %p1110_p2 = scmp.ne.s32.totalorder %s805_s28, %s1109_s29  ;;  %p1115_p4 = scmp.lt.s32.totalorder %s1109_s29, %s1109_s29 }
  0x2b   :  { %928 = vmatpush3.bf16.msra.mxu1 %v1025_v10  ;;  %v1029_v14 = vld [vmem:[#allocation2 + $0x60] sm:$0xff]   ;;  %v1031_v16 = vld [vmem:[#allocation2 + $0x70] sm:$0xff]   ;;  %v1032_v17 = vld [vmem:[#allocation2 + $0x78] sm:$0xff]  }
  0x2c   :  { %929 = vmatprep.subr.bf16.mxu1 %v1141_v0  ;;  %v52_v21 = vld [vmem:[%s1300_s2] sm:$0x7]  ;;  %v1038_v10 = vld [vmem:[#allocation2 + $0xa8] sm:$0xff]   ;;  %p1116_p5 = por %p1115_p4, %p1114_p3 }
  0x2d   :  { %910 = vmatpush3.bf16.msra.mxu0 %v1017_v2  ;;  %v72_v22 = vrot.slane %v52_v21, %v1227_v20 }
  0x2e   :  { %911 = vmatprep.subr.bf16.mxu0 %v1141_v0  ;;  %p1117_p6 = pnand %p1116_p5, %p1110_p2 }
  0x2f   :  { %930 = vmatpush3.bf16.msra.mxu1 %v1026_v11  ;;  %v1039_v11 = vld [vmem:[#allocation2 + $0xb0] sm:$0xff]  }
  0x30   :  { %931 = vmatprep.subr.bf16.mxu1 %v1141_v0 }
  0x31   :  { %912 = vmatpush3.bf16.msra.mxu0 %v1018_v3 }
  0x32   :  { %913 = vmatprep.subr.bf16.mxu0 %v1141_v0 }
  0x33   :  { %932 = vmatpush3.bf16.msra.mxu1 %v1027_v12  ;;  %v1040_v12 = vld [vmem:[#allocation2 + $0xb8] sm:$0xff]  }
  0x34   :  { %933 = vmatprep.subr.bf16.mxu1 %v1141_v0 }
  0x35   :  { %914 = vmatpush3.bf16.msra.mxu0 %v1019_v4 }
  0x36   :  { %915 = vmatprep.subr.bf16.mxu0 %v1141_v0 }
  0x37   :  { %934 = vmatpush3.bf16.msra.mxu1 %v1028_v13  ;;  %v826_v13 = vld [vmem:[%s1300_s2 + $0x4] sm:$0x7] }
  0x38   :  { %935 = vmatprep.subr.bf16.mxu1 %v1141_v0 }
  0x39   :  { %916 = vmatpush3.bf16.msra.mxu0 %v1020_v5  ;;  %v1033_v5 = vld [vmem:[#allocation2 + $0x80] sm:$0xff]  }
  0x3a   :  { %917 = vmatprep.subr.bf16.mxu0 %v1141_v0 }
  0x3b   :  { %936 = vmatpush3.bf16.msra.mxu1 %v1029_v14  ;;  %v236_v14 = vrot.slane %v826_v13, %v1227_v20 }
  0x3c   :  { %937 = vmatprep.subr.bf16.mxu1 %v1141_v0 }
  0x3d   :  { %918 = vmatpush3.bf16.msra.mxu0 %v1021_v6  ;;  %v1034_v6 = vld [vmem:[#allocation2 + $0x88] sm:$0xff]  }
  0x3e   :  { %919 = vmatprep.subr.bf16.mxu0 %v1141_v0 }
  0x3f   :  { %938 = vmatpush3.bf16.msra.mxu1 %v1030_v15 }
  0x40   :  { %939 = vmatprep.subr.bf16.mxu1 %v1141_v0 }
  0x41   :  { %920 = vmatpush3.bf16.msra.mxu0 %v1022_v7  ;;  %v1035_v7 = vld [vmem:[#allocation2 + $0x90] sm:$0xff]  }
  0x42   :  { %921 = vmatprep.subr.bf16.mxu0 %v1141_v0 }
  0x43   :  { %940 = vmatpush3.bf16.msra.mxu1 %v1031_v16 }
  0x44   :  { %941 = vmatprep.subr.bf16.mxu1 %v1141_v0 }
  0x45   :  { %922 = vmatpush3.bf16.msra.mxu0 %v1023_v8  ;;  %v1036_v8 = vld [vmem:[#allocation2 + $0x98] sm:$0xff]  }
  0x46   :  { %947 = vmatprep.subr.bf16.mxu0 %v1141_v0 }
  0x47   :  { %942 = vmatpush3.bf16.msra.mxu1 %v1032_v17 }
  0x48   :  { %924 = vmatmul.mubr.bf16.vlgmr.msra.gmra.mrb[0].mxu0 %v1024_v9  ;;  %967 = vmatprep.subr.bf16.mxu1 %v1141_v0  ;;  %v1037_v9 = vld [vmem:[#allocation2 + $0xa0] sm:$0xff]  }
  0x49   :  { %963 = vmatprep.mubr.msk.bf16.mxu0 %vm1142_vm0, %v1141_v0  ;;  %948 = vmatpush3.bf16.msra.mxu0 %v1033_v5  ;;  %v1048_v5 = vld [vmem:[#allocation2 + $0xf8] sm:$0xff]  }
  0x4a   :  { %949 = vmatprep.subr.bf16.mxu0 %v1141_v0 }
  0x4d   :  { %950 = vmatpush3.bf16.msra.mxu0 %v1034_v6  ;;  %v835_v6 = vld [vmem:[%s1300_s2 + $0x8] sm:$0x7] }
  0x4e   :  { %951 = vmatprep.subr.bf16.mxu0 %v1141_v0 }
  0x51   :  { %952 = vmatpush3.bf16.msra.mxu0 %v1035_v7  ;;  %v393_v7 = vrot.slane %v835_v6, %v1227_v20 }
  0x52   :  { %953 = vmatprep.subr.bf16.mxu0 %v1141_v0 }
  0x55   :  { %954 = vmatpush3.bf16.msra.mxu0 %v1036_v8 }
  0x56   :  { %955 = vmatprep.subr.bf16.mxu0 %v1141_v0 }
  0x59   :  { %956 = vmatpush3.bf16.msra.mxu0 %v1037_v9 }
  0x5a   :  { %957 = vmatprep.subr.bf16.mxu0 %v1141_v0 }
  0x5d   :  { %958 = vmatpush3.bf16.msra.mxu0 %v1038_v10 }
  0x5e   :  { %959 = vmatprep.subr.bf16.mxu0 %v1141_v0 }
  0x61   :  { %960 = vmatpush3.bf16.msra.mxu0 %v1039_v11 }
  0x62   :  { %961 = vmatprep.subr.bf16.mxu0 %v1141_v0 }
  0x65   :  { %962 = vmatpush3.bf16.msra.mxu0 %v1040_v12 }
  0x66   :  { %987 = vmatprep.subr.bf16.mxu0 %v1141_v0 }
 0x11b   :  { %v161_v23 = vpop.f32.mrb[0].mxu0 }
 0x11c   :  { %v162_v24 = vadd.f32 %v161_v23, %v72_v22  ;;  %v925_v25 = vpop.f32.mrb[1].mxu0 }
 0x11d   :  { %v164_v26 = vpop.f32.mrb[2].mxu0 }
 0x11e   :  { %v168_v27 = vmul.f32 0.01, %v162_v24  ;;  %v165_v28 = vadd.f32 %v164_v26, %v72_v22  ;;  %v926_v29 = vpop.f32.mrb[3].mxu0 }
 0x120   :  { %v169_v30 = vmul.f32 0.01, %v165_v28  ;;  %v170_v31 = vmax.f32 %v162_v24, %v168_v27 }
 0x122   :  { %v171_v32 = vmax.f32 %v165_v28, %v169_v30 }
 0x124   :  { %v172_v33 = vadd.f32 %v171_v32, %v170_v31 }
 0x126   :  { %v173_v34 = vrot.slane %v172_v33, 4 }
 0x128   :  { %v174_v35 = vadd.f32 %v173_v34, %v172_v33 }
 0x12a   :  { %v175_v36 = vrot.slane %v174_v35, 2 }
 0x12c   :  { %v176_v37 = vadd.f32 %v175_v36, %v174_v35 }
 0x12e   :  { %v177_v38 = vrot.slane %v176_v37, 1 }
 0x130   :  { %v178_v39 = vadd.f32 %v177_v38, %v176_v37 }
 0x132   :  { %v180_v40 = vmul.f32 0.0625, %v178_v39 }
 0x134   :  { %v181_v41 = vsub.f32 %v170_v31, %v180_v40  ;;  %v182_v42 = vsub.f32 %v171_v32, %v180_v40 }
 0x136   :  { %v183_v43 = vmul.f32 %v181_v41, %v181_v41  ;;  %v184_v44 = vmul.f32 %v182_v42, %v182_v42 }
 0x138   :  { %v185_v45 = vadd.f32 %v184_v44, %v183_v43 }
 0x13a   :  { %v186_v46 = vrot.slane %v185_v45, 4 }
 0x13c   :  { %v187_v47 = vadd.f32 %v186_v46, %v185_v45 }
 0x13e   :  { %v188_v48 = vrot.slane %v187_v47, 2 }
 0x140   :  { %v189_v49 = vadd.f32 %v188_v48, %v187_v47 }
 0x142   :  { %v190_v50 = vrot.slane %v189_v49, 1 }
 0x144   :  { %v191_v51 = vadd.f32 %v190_v50, %v189_v49 }
 0x146   :  { %v192_v52 = vmul.f32 0.0625, %v191_v51 }
 0x148   :  { %v193_v53 = vadd.f32 1e-05, %v192_v52 }
 0x14a   :  { %1057 = vrsqrt.f32 %v193_v53 }
 0x154   :  { %v1058_v55 = vpop.eup %1057 }
 0x155   :  { %v195_v56 = vmul.f32 %v1058_v55, %v52_v21 }
 0x157   :  { %v199_v57 = vrot.slane %v195_v56, %v1233_v54  ;;  %v202_v58 = vmul.f32 %v195_v56, %v180_v40 }
 0x159   :  { %v201_v59 = vmul.f32 %v199_v57, %v171_v32  ;;  %v200_v60 = vmul.f32 %v199_v57, %v170_v31  ;;  %v204_v61 = vrot.slane %v202_v58, 7 }
 0x15b   :  { %v206_v63 = vsub.f32 %v52_v21, %v204_v61  ;;  %v1042_v61 = vld [vmem:[#allocation2 + $0xc8] sm:$0xff]  }
 0x15d   :  { %v210_v1 = vrot.slane %v206_v63, %v1236_v62  ;;  %v1043_v63 = vld [vmem:[#allocation2 + $0xd0] sm:$0xff]  }
 0x15f   :  { %v211_v2 = vadd.f32 %v210_v1, %v200_v60  ;;  %v212_v3 = vadd.f32 %v210_v1, %v201_v59  ;;  %v1041_v60 = vld [vmem:[#allocation2 + $0xc0] sm:$0xff]   ;;  %v1044_v1 = vld [vmem:[#allocation2 + $0xd8] sm:$0xff]  }
 0x161   :  { %v215_v4 = vpack.c.bf16 %v212_v3, %v211_v2  ;;  %v1045_v2 = vld [vmem:[#allocation2 + $0xe0] sm:$0xff]   ;;  %v1046_v3 = vld [vmem:[#allocation2 + $0xe8] sm:$0xff]  }
 0x163   :  { %944 = vmatmul.mubr.bf16.vlgmr.msra.gmra.mrb[0].mxu1 %v215_v4  ;;  %v1047_v4 = vld [vmem:[#allocation2 + $0xf0] sm:$0xff]  }
 0x164   :  { %983 = vmatprep.mubr.msk.bf16.mxu1 %vm1142_vm0, %v1141_v0  ;;  %968 = vmatpush3.bf16.msra.mxu1 %v1041_v60  ;;  %v1056_v60 = vld [vmem:[#allocation5 + $0x38] sm:$0xff]  }
 0x165   :  { %969 = vmatprep.subr.bf16.mxu1 %v1141_v0 }
 0x168   :  { %970 = vmatpush3.bf16.msra.mxu1 %v1042_v61  ;;  %v844_v61 = vld [vmem:[%s1300_s2 + $0xc] sm:$0x7] }
 0x169   :  { %971 = vmatprep.subr.bf16.mxu1 %v1141_v0 }
 0x16c   :  { %972 = vmatpush3.bf16.msra.mxu1 %v1043_v63  ;;  %v550_v63 = vrot.slane %v844_v61, %v1227_v20 }
 0x16d   :  { %973 = vmatprep.subr.bf16.mxu1 %v1141_v0 }
 0x170   :  { %974 = vmatpush3.bf16.msra.mxu1 %v1044_v1 }
 0x171   :  { %975 = vmatprep.subr.bf16.mxu1 %v1141_v0 }
 0x174   :  { %976 = vmatpush3.bf16.msra.mxu1 %v1045_v2 }
 0x175   :  { %977 = vmatprep.subr.bf16.mxu1 %v1141_v0 }
 0x178   :  { %978 = vmatpush3.bf16.msra.mxu1 %v1046_v3 }
 0x179   :  { %979 = vmatprep.subr.bf16.mxu1 %v1141_v0 }
 0x17c   :  { %980 = vmatpush3.bf16.msra.mxu1 %v1047_v4 }
 0x17d   :  { %981 = vmatprep.subr.bf16.mxu1 %v1141_v0 }
 0x180   :  { %982 = vmatpush3.bf16.msra.mxu1 %v1048_v5 }
 0x236   :  { %v319_v15 = vpop.f32.mrb[0].mxu1 }
 0x237   :  { %v320_v16 = vadd.f32 %v319_v15, %v236_v14  ;;  %v945_v17 = vpop.f32.mrb[1].mxu1 }
 0x238   :  { %v322_v18 = vpop.f32.mrb[2].mxu1 }
 0x239   :  { %v326_v19 = vmul.f32 0.01, %v320_v16  ;;  %v323_v21 = vadd.f32 %v322_v18, %v236_v14  ;;  %v946_v22 = vpop.f32.mrb[3].mxu1 }
 0x23b   :  { %v327_v23 = vmul.f32 0.01, %v323_v21  ;;  %v328_v24 = vmax.f32 %v320_v16, %v326_v19 }
 0x23d   :  { %v329_v25 = vmax.f32 %v323_v21, %v327_v23 }
 0x23f   :  { %v330_v26 = vadd.f32 %v329_v25, %v328_v24 }
 0x241   :  { %v331_v27 = vrot.slane %v330_v26, 4 }
 0x243   :  { %v332_v28 = vadd.f32 %v331_v27, %v330_v26 }
 0x245   :  { %v333_v29 = vrot.slane %v332_v28, 2 }
 0x247   :  { %v334_v30 = vadd.f32 %v333_v29, %v332_v28 }
 0x249   :  { %v335_v31 = vrot.slane %v334_v30, 1 }
 0x24b   :  { %v336_v32 = vadd.f32 %v335_v31, %v334_v30 }
 0x24d   :  { %v337_v33 = vmul.f32 0.0625, %v336_v32 }
 0x24f   :  { %v338_v34 = vsub.f32 %v328_v24, %v337_v33  ;;  %v339_v35 = vsub.f32 %v329_v25, %v337_v33 }
 0x251   :  { %v340_v36 = vmul.f32 %v338_v34, %v338_v34  ;;  %v341_v37 = vmul.f32 %v339_v35, %v339_v35 }
 0x253   :  { %v342_v38 = vadd.f32 %v341_v37, %v340_v36 }
 0x255   :  { %v343_v39 = vrot.slane %v342_v38, 4 }
 0x257   :  { %v344_v40 = vadd.f32 %v343_v39, %v342_v38 }
 0x259   :  { %v345_v41 = vrot.slane %v344_v40, 2 }
 0x25b   :  { %v346_v42 = vadd.f32 %v345_v41, %v344_v40 }
 0x25d   :  { %v347_v43 = vrot.slane %v346_v42, 1 }
 0x25f   :  { %v348_v44 = vadd.f32 %v347_v43, %v346_v42 }
 0x261   :  { %v349_v45 = vmul.f32 0.0625, %v348_v44 }
 0x263   :  { %v350_v46 = vadd.f32 1e-05, %v349_v45 }
 0x265   :  { %1059 = vrsqrt.f32 %v350_v46 }
 0x26f   :  { %v1060_v47 = vpop.eup %1059 }
 0x270   :  { %v352_v48 = vmul.f32 %v1060_v47, %v826_v13 }
 0x272   :  { %v356_v49 = vrot.slane %v352_v48, %v1233_v54  ;;  %v359_v50 = vmul.f32 %v352_v48, %v337_v33 }
 0x274   :  { %v357_v51 = vmul.f32 %v356_v49, %v328_v24  ;;  %v358_v52 = vmul.f32 %v356_v49, %v329_v25  ;;  %v361_v53 = vrot.slane %v359_v50, 7 }
 0x276   :  { %v363_v55 = vsub.f32 %v826_v13, %v361_v53  ;;  %v1050_v53 = vld [vmem:[#allocation5 + $0x8] sm:$0xff]  }
 0x278   :  { %v367_v56 = vrot.slane %v363_v55, %v1236_v62  ;;  %v1051_v55 = vld [vmem:[#allocation5 + $0x10] sm:$0xff]  }
 0x27a   :  { %v369_v57 = vadd.f32 %v367_v56, %v358_v52  ;;  %v368_v58 = vadd.f32 %v367_v56, %v357_v51  ;;  %v1049_v52 = vld [vmem:[#allocation5] sm:$0xff]   ;;  %v1052_v56 = vld [vmem:[#allocation5 + $0x18] sm:$0xff]  }
 0x27c   :  { %v372_v59 = vpack.c.bf16 %v369_v57, %v368_v58  ;;  %v1053_v57 = vld [vmem:[#allocation5 + $0x20] sm:$0xff]   ;;  %v1054_v58 = vld [vmem:[#allocation5 + $0x28] sm:$0xff]  }
 0x27e   :  { %964 = vmatmul.mubr.bf16.vlgmr.msra.gmra.mrb[4].mxu0 %v372_v59  ;;  %v1055_v59 = vld [vmem:[#allocation5 + $0x30] sm:$0xff]  }
 0x27f   :  { %1003 = vmatprep.mubr.msk.bf16.mxu0 %vm1142_vm0, %v1141_v0  ;;  %988 = vmatpush3.bf16.msra.mxu0 %v1049_v52 }
 0x280   :  { %989 = vmatprep.subr.bf16.mxu0 %v1141_v0 }
 0x283   :  { %990 = vmatpush3.bf16.msra.mxu0 %v1050_v53 }
 0x284   :  { %991 = vmatprep.subr.bf16.mxu0 %v1141_v0 }
 0x287   :  { %992 = vmatpush3.bf16.msra.mxu0 %v1051_v55 }
 0x288   :  { %993 = vmatprep.subr.bf16.mxu0 %v1141_v0 }
 0x28b   :  { %994 = vmatpush3.bf16.msra.mxu0 %v1052_v56 }
 0x28c   :  { %995 = vmatprep.subr.bf16.mxu0 %v1141_v0 }
 0x28f   :  { %996 = vmatpush3.bf16.msra.mxu0 %v1053_v57 }
 0x290   :  { %997 = vmatprep.subr.bf16.mxu0 %v1141_v0 }
 0x293   :  { %998 = vmatpush3.bf16.msra.mxu0 %v1054_v58 }
 0x294   :  { %999 = vmatprep.subr.bf16.mxu0 %v1141_v0 }
 0x297   :  { %1000 = vmatpush3.bf16.msra.mxu0 %v1055_v59 }
 0x298   :  { %1001 = vmatprep.subr.bf16.mxu0 %v1141_v0 }
 0x29b   :  { %1002 = vmatpush3.bf16.msra.mxu0 %v1056_v60 }
 0x351   :  { %v476_v8 = vpop.f32.mrb[4].mxu0 }
 0x352   :  { %v477_v9 = vadd.f32 %v476_v8, %v393_v7  ;;  %v965_v10 = vpop.f32.mrb[5].mxu0 }
 0x353   :  { %v479_v11 = vpop.f32.mrb[6].mxu0 }
 0x354   :  { %v483_v12 = vmul.f32 0.01, %v477_v9  ;;  %v480_v13 = vadd.f32 %v479_v11, %v393_v7  ;;  %v966_v14 = vpop.f32.mrb[7].mxu0 }
 0x356   :  { %v484_v15 = vmul.f32 0.01, %v480_v13  ;;  %v485_v16 = vmax.f32 %v477_v9, %v483_v12 }
 0x358   :  { %v486_v17 = vmax.f32 %v480_v13, %v484_v15 }
 0x35a   :  { %v487_v18 = vadd.f32 %v486_v17, %v485_v16 }
 0x35c   :  { %v488_v19 = vrot.slane %v487_v18, 4 }
 0x35e   :  { %v489_v21 = vadd.f32 %v488_v19, %v487_v18 }
 0x360   :  { %v490_v22 = vrot.slane %v489_v21, 2 }
 0x362   :  { %v491_v23 = vadd.f32 %v490_v22, %v489_v21 }
 0x364   :  { %v492_v24 = vrot.slane %v491_v23, 1 }
 0x366   :  { %v493_v25 = vadd.f32 %v492_v24, %v491_v23 }
 0x368   :  { %v494_v26 = vmul.f32 0.0625, %v493_v25 }
 0x36a   :  { %v495_v27 = vsub.f32 %v485_v16, %v494_v26  ;;  %v496_v28 = vsub.f32 %v486_v17, %v494_v26 }
 0x36c   :  { %v497_v29 = vmul.f32 %v495_v27, %v495_v27  ;;  %v498_v30 = vmul.f32 %v496_v28, %v496_v28 }
 0x36e   :  { %v499_v31 = vadd.f32 %v498_v30, %v497_v29 }
 0x370   :  { %v500_v32 = vrot.slane %v499_v31, 4 }
 0x372   :  { %v501_v33 = vadd.f32 %v500_v32, %v499_v31 }
 0x374   :  { %v502_v34 = vrot.slane %v501_v33, 2 }
 0x376   :  { %v503_v35 = vadd.f32 %v502_v34, %v501_v33 }
 0x378   :  { %v504_v36 = vrot.slane %v503_v35, 1 }
 0x37a   :  { %v505_v37 = vadd.f32 %v504_v36, %v503_v35 }
 0x37c   :  { %v506_v38 = vmul.f32 0.0625, %v505_v37 }
 0x37e   :  { %v507_v39 = vadd.f32 1e-05, %v506_v38 }
 0x380   :  { %1061 = vrsqrt.f32 %v507_v39 }
 0x38a   :  { %v1062_v40 = vpop.eup %1061 }
 0x38b   :  { %v509_v41 = vmul.f32 %v1062_v40, %v835_v6 }
 0x38d   :  { %v513_v42 = vrot.slane %v509_v41, %v1233_v54  ;;  %v516_v43 = vmul.f32 %v509_v41, %v494_v26 }
 0x38f   :  { %v514_v44 = vmul.f32 %v513_v42, %v485_v16  ;;  %v515_v45 = vmul.f32 %v513_v42, %v486_v17  ;;  %v518_v46 = vrot.slane %v516_v43, 7  ;;  %v853_v43 = vld [vmem:[%s1302_s4] ss:$0 sm:$0xff] }
 0x391   :  { %v520_v47 = vsub.f32 %v835_v6, %v518_v46 }
 0x393   :  { %v524_v48 = vrot.slane %v520_v47, %v1236_v62 }
 0x395   :  { %v526_v49 = vadd.f32 %v524_v48, %v515_v45  ;;  %v525_v50 = vadd.f32 %v524_v48, %v514_v44 }
 0x397   :  { %v529_v51 = vpack.c.bf16 %v526_v49, %v525_v50 }
 0x399   :  { %984 = vmatmul.mubr.bf16.vlgmr.msra.gmra.mrb[4].mxu1 %v529_v51 }
 0x46c   :  { %v633_v1 = vpop.f32.mrb[4].mxu1 }
 0x46d   :  { %v634_v2 = vadd.f32 %v633_v1, %v550_v63  ;;  %v985_v3 = vpop.f32.mrb[5].mxu1 }
 0x46e   :  { %v636_v4 = vpop.f32.mrb[6].mxu1 }
 0x46f   :  { %v640_v5 = vmul.f32 0.01, %v634_v2  ;;  %v637_v6 = vadd.f32 %v636_v4, %v550_v63  ;;  %v986_v7 = vpop.f32.mrb[7].mxu1 }
 0x471   :  { %v641_v8 = vmul.f32 0.01, %v637_v6  ;;  %v642_v9 = vmax.f32 %v634_v2, %v640_v5 }
 0x473   :  { %v643_v10 = vmax.f32 %v637_v6, %v641_v8 }
 0x475   :  { %v644_v11 = vadd.f32 %v643_v10, %v642_v9 }
 0x477   :  { %v645_v0 = vrot.slane %v644_v11, 4 }
 0x479   :  { %v646_v12 = vadd.f32 %v645_v0, %v644_v11 }
 0x47b   :  { %v647_v13 = vrot.slane %v646_v12, 2 }
 0x47d   :  { %v648_v14 = vadd.f32 %v647_v13, %v646_v12 }
 0x47f   :  { %v649_v15 = vrot.slane %v648_v14, 1 }
 0x481   :  { %v650_v16 = vadd.f32 %v649_v15, %v648_v14 }
 0x483   :  { %v651_v17 = vmul.f32 0.0625, %v650_v16 }
 0x485   :  { %v652_v18 = vsub.f32 %v642_v9, %v651_v17  ;;  %v653_v20 = vsub.f32 %v643_v10, %v651_v17 }
 0x487   :  { %v654_v19 = vmul.f32 %v652_v18, %v652_v18  ;;  %v655_v21 = vmul.f32 %v653_v20, %v653_v20 }
 0x489   :  { %v656_v22 = vadd.f32 %v655_v21, %v654_v19 }
 0x48b   :  { %v657_v23 = vrot.slane %v656_v22, 4 }
 0x48d   :  { %v658_v24 = vadd.f32 %v657_v23, %v656_v22 }
 0x48f   :  { %v659_v25 = vrot.slane %v658_v24, 2 }
 0x491   :  { %v660_v26 = vadd.f32 %v659_v25, %v658_v24 }
 0x493   :  { %v661_v27 = vrot.slane %v660_v26, 1 }
 0x495   :  { %v662_v28 = vadd.f32 %v661_v27, %v660_v26 }
 0x497   :  { %v663_v29 = vmul.f32 0.0625, %v662_v28 }
 0x499   :  { %v664_v30 = vadd.f32 1e-05, %v663_v29 }
 0x49b   :  { %1063 = vrsqrt.f32 %v664_v30 }
 0x4a5   :  { %v1064_v31 = vpop.eup %1063 }
 0x4a6   :  { %v666_v32 = vmul.f32 %v1064_v31, %v844_v61 }
 0x4a8   :  { %v670_v33 = vrot.slane %v666_v32, %v1233_v54  ;;  %v673_v34 = vmul.f32 %v666_v32, %v651_v17 }
 0x4aa   :  { %v671_v35 = vmul.f32 %v670_v33, %v642_v9  ;;  %v672_v36 = vmul.f32 %v670_v33, %v643_v10  ;;  %v675_v37 = vrot.slane %v673_v34, 7 }
 0x4ac   :  { %v677_v38 = vsub.f32 %v844_v61, %v675_v37 }
 0x4ae   :  { %v681_v39 = vrot.slane %v677_v38, %v1236_v62 }
 0x4b0   :  { %v683_v40 = vadd.f32 %v681_v39, %v672_v36  ;;  %v682_v41 = vadd.f32 %v681_v39, %v671_v35 }
 0x4b2   :  { %v684_v42 = vpack.c.bf16 %v683_v40, %v682_v41 }
 0x4b4   :  { %1004 = vmatmul.mubr.bf16.vlgmr.msra.gmra.mrb[8].mxu0 %v684_v42 }
 0x587   :  { %v790_v44 = vpop.f32.mrb[8].mxu0 }
 0x588   :  { %v791_v45 = vadd.f32 %v853_v43, %v790_v44  ;;  %v1005_v54 = vpop.f32.mrb[9].mxu0 }
 0x589   :  { %v793_v46 = vpop.f32.mrb[10].mxu0 }
 0x58a   :  { %797 = vst [vmem:[#allocation7] sm:$0xff] %v791_v45  ;;  %v794_v47 = vadd.f32 %v853_v43, %v793_v46  ;;  %v1006_v48 = vpop.f32.mrb[11].mxu0 }
 0x58c   :  { %798 = vst [vmem:[#allocation7 + $0x8] sm:$0xff] %v794_v47 }
 0x58d   :  { %1120 = shalt.err (!%p1117_p6)
}
 0x58e   :  { %s1121_s6 = scalar_lea.hbm %s1303_s5, 256 }
 0x58f   :  { %p1122_p7 = scmp.ne.s32.totalorder %s1303_s5, %s1121_s6  ;;  %p1125_p8 = scmp.lt.u32.totalorder %s1121_s6, %s1303_s5 }
 0x591   :  { %p1127_p9 = pnand %p1125_p8, %p1122_p7 }
 0x593   :  { %1130 = shalt.err (!%p1127_p9)
}
 0x594   :  { %s1144_s11 = smov 128   ;;  %s1145_s12 = smov 8  }
 0x595   :  { %810 = dma.vmem_to_hbm [thread:$0]  %s805_s28, 256, %s1303_s5, [#allocation4], %s1144_s11, %s1144_s11, %s1145_s12  }
 0x596   :  { %1135 = dma.done.wait [#allocation4], 256  }
 0x597   :  { %1136 = vsyncadd [#allocation4], 4294967040 }
 0x598   :  { %814 = vsyncpa [#allocation3], 1 }
 0x599   :  { %815 = vsyncpa [#allocation6], 1 }
 0x59a   :  { %816 = vsyncpa [#allocation4], 1 }

</bundles_post_ra>
